<compile_context>
chip_gen: v7x
topology: tpu7x:2x2x1
jax: 0.10.0
libtpu: 0.0.40
codegen_flags: <defaults>
</compile_context>

<pallas_src>
import functools

import jax
import jax.numpy as jnp
from jax.experimental import pallas as pl
from jax.experimental.pallas import tpu as pltpu

L1, L2, L3 = 9, 70, 219
C = L1 + L2 + L3          # 298
SEG_OFF = C - L3          # 79 : first column of the 219-class segment
NUM_PARTIALS = 2          # v7x has 2 TensorCores; harmless on v5e/v6e


def _round_up(x, m):
    return (x + m - 1) // m * m


def _ce3_kernel(col_ids_ref, col_bias_ref, pred_ref, lab_ref, out_ref, acc_ref,
                *, n_total, steps_per_par, tile_n):
    """Accumulates sum over rows of CE(pred[:, -219:], labels[:, 2]) per partial."""
    p = pl.program_id(0)   # parallel partial index
    i = pl.program_id(1)   # reduction step within the partial

    @pl.when(i == 0)
    def _():
        acc_ref[...] = jnp.zeros_like(acc_ref)

    x = pred_ref[...].astype(jnp.float32)          # (tile_n, C) f32 compute
    lab = lab_ref[...]                             # (tile_n, 1) int32
    col_ids = col_ids_ref[...]                     # (1, C) int32 (constant)
    col_bias = col_bias_ref[...]                   # (1, C) f32: 0 in segment, -1e30 outside
    tn = x.shape[0]

    # Masked log-sum-exp over the 219-class segment via a precomputed additive
    # bias (no per-step iota / compare / where passes).
    xm = x + col_bias                              # (tile_n, C)
    m = jnp.max(xm, axis=-1, keepdims=True)        # (tile_n, 1)  lane reduce
    s = jnp.sum(jnp.exp(xm - m), axis=-1, keepdims=True)   # masked cols -> exp(~-1e30)=0
    lse = m + jnp.log(s)                           # (tile_n, 1)

    # Row validity (handles the padded remainder tile and out-of-range steps of
    # the padded parallel split).  Mask BEFORE any reduction.
    global_step = p * steps_per_par + i
    row = jax.lax.broadcasted_iota(jnp.int32, (tn, 1), 0)
    row_valid = (global_step * tile_n + row) < n_total      # (tile_n, 1) bool

    # Label-logit sum: fold row validity into the select mask, reduce axis=0
    # first (VPU adds), then a single lane reduce.
    pick_mask = (col_ids == (lab + SEG_OFF)) & row_valid    # (tile_n, C)
    picked_cols = jnp.sum(jnp.where(pick_mask, x, jnp.float32(0.0)),
                          axis=0, keepdims=True)            # (1, C)
    picked_part = jnp.sum(picked_cols, axis=-1, keepdims=True)  # (1, 1)

    lse_part = jnp.sum(jnp.where(row_valid, lse, jnp.float32(0.0)),
                       axis=0, keepdims=True)               # (1, 1)

    acc_ref[...] += lse_part - picked_part

    @pl.when(i == steps_per_par - 1)
    def _():
        # Write the (unnormalized) partial sum; scaling happens in the wrapper.
        out_ref[...] = jnp.broadcast_to(acc_ref[...], out_ref.shape)


def loss_forward(pred, labels, *, tile_n=2048, num_partials=NUM_PARTIALS,
                 vmem_limit_bytes=48 * 1024 * 1024):
    """Equivalent of Loss.forward(pred, labels) -> scalar float32.

    tile_n: rows per grid step.  2048 rows x 298 cols f32 ~= 3 MiB (lane-padded
    to 384) per buffer — safe under default scoped VMEM everywhere.  On v5e,
    tile_n=4096 amortizes per-step overhead further (the raised
    vmem_limit_bytes makes that legal).  pred may be bf16 (halves HBM traffic);
    all math is f32 in-kernel.
    """
    n, c = pred.shape
    assert c == C, f"expected {C} classes on the last axis, got {c}"

    # Only the third label column feeds the returned loss.
    lab3 = labels[..., 2].astype(jnp.int32).reshape(n, 1)

    tile_n = _round_up(max(8, min(tile_n, _round_up(n, 8))), 8)
    total_steps = pl.cdiv(n, tile_n)
    n_par = max(1, min(num_partials, total_steps))
    spp = pl.cdiv(total_steps, n_par)               # reduction steps per partial

    # Tiny resident constants: column ids and the segment mask as an additive
    # bias (0 inside the 219-class segment, -1e30 outside).
    col_ids = jnp.arange(C, dtype=jnp.int32).reshape(1, C)
    col_bias = jnp.where(col_ids >= SEG_OFF,
                         jnp.float32(0.0), jnp.float32(-1e30))

    def big_map(p, i):
        # Clamp out-of-range steps of the padded parallel split to a valid
        # block; their rows are zeroed by the in-kernel row mask.
        return (jnp.minimum(p * spp + i, total_steps - 1), 0)

    def const_map(p, i):
        return (0, 0)

    cost = pl.CostEstimate(
        flops=int(6 * n * C),
        transcendentals=int(n * C),
        bytes_accessed=int(n * C * pred.dtype.itemsize + n * 4 + n_par * 4),
    )

    partials = pl.pallas_call(
        functools.partial(_ce3_kernel, n_total=n, steps_per_par=spp,
                          tile_n=tile_n),
        out_shape=jax.ShapeDtypeStruct((n_par, 8, 128), jnp.float32),
        grid_spec=pltpu.PrefetchScalarGridSpec(
            num_scalar_prefetch=0,
            grid=(n_par, spp),
            in_specs=[
                pl.BlockSpec((1, C), const_map),          # col_ids
                pl.BlockSpec((1, C), const_map),          # col_bias
                pl.BlockSpec((tile_n, C), big_map),       # pred
                pl.BlockSpec((tile_n, 1), big_map),       # labels[..., 2]
            ],
            out_specs=pl.BlockSpec((1, 8, 128), lambda p, i: (p, 0, 0)),
            scratch_shapes=[pltpu.VMEM((1, 1), jnp.float32)],
        ),
        compiler_params=pltpu.CompilerParams(
            dimension_semantics=("parallel", "arbitrary"),
            vmem_limit_bytes=vmem_limit_bytes,
        ),
        cost_estimate=cost,
    )(col_ids, col_bias, pred, lab3)

    # Sum the per-core partials; fold the /N (mean) and /219 into one multiply.
    total = jnp.sum(partials[:, 0, 0])
    return total * jnp.float32(1.0 / (n * L3))


def _loss_ref(pred, labels):
    """Pure-JAX reference of the original PyTorch forward (for sanity check)."""
    def ce(logits, lab):
        logits = logits.astype(jnp.float32)
        lse = jax.scipy.special.logsumexp(logits, axis=-1)
        picked = jnp.take_along_axis(logits, lab[:, None], axis=-1)[:, 0]
        return jnp.mean(lse - picked)

    loss = ce(pred[..., :L1], labels[..., 0]) / L1
    loss = loss + ce(pred[..., L1:L1 + L2], labels[..., 1]) / L2
    loss = ce(pred[..., -L3:], labels[..., 2]) / L3   # reassignment, as in torch source
    return loss


if __name__ == "__main__":
    key = jax.random.PRNGKey(0)
    k_pred, k0, k1, k2, k_pred2 = jax.random.split(key, 5)

    # Small case (single tile, single partial), f32 pred.
    N = 8
    pred = jax.random.normal(k_pred, (N, C), dtype=jnp.float32)
    labels = jnp.stack(
        [
            jax.random.randint(k0, (N,), 0, L1, dtype=jnp.int32),
            jax.random.randint(k1, (N,), 0, L2, dtype=jnp.int32),
            jax.random.randint(k2, (N,), 0, L3, dtype=jnp.int32),
        ],
        axis=-1,
    )
    out = jax.block_until_ready(loss_forward(pred, labels))
    ref = _loss_ref(pred, labels)
    assert jnp.allclose(out, ref, atol=1e-5, rtol=1e-5), (out, ref)

    # Multi-tile case with a remainder + 2 parallel partials + bf16 pred path.
    N2 = 20
    pred2 = jax.random.normal(k_pred2, (N2, C), dtype=jnp.float32).astype(jnp.bfloat16)
    labels2 = jnp.stack(
        [
            jax.random.randint(k0, (N2,), 0, L1, dtype=jnp.int32),
            jax.random.randint(k1, (N2,), 0, L2, dtype=jnp.int32),
            jax.random.randint(k2, (N2,), 0, L3, dtype=jnp.int32),
        ],
        axis=-1,
    )
    out2 = jax.block_until_ready(loss_forward(pred2, labels2, tile_n=8))
    ref2 = _loss_ref(pred2, labels2)
    assert jnp.allclose(out2, ref2, atol=1e-5, rtol=1e-5), (out2, ref2)

    print("KERNEL_OK")
</pallas_src>

<mosaic_0001>
module attributes {stable_mosaic.version = 11 : i64} {
  func.func @_ce3_kernel(%arg0: i32, %arg1: i32, %arg2: memref<1x298xi32, #tpu.memory_space<vmem>>, %arg3: memref<1x298xf32, #tpu.memory_space<vmem>>, %arg4: memref<8x298xf32, #tpu.memory_space<vmem>>, %arg5: memref<8x1xi32, #tpu.memory_space<vmem>>, %arg6: memref<1x8x128xf32, #tpu.memory_space<vmem>>, %arg7: memref<1x1xf32, #tpu.memory_space<vmem>>) attributes {dimension_semantics = [#tpu.dimension_semantics<parallel>, #tpu.dimension_semantics<arbitrary>], iteration_bounds = array<i64: 1, 1>, scalar_prefetch = 0 : i64, scratch_operands = 1 : i64, tpu.core_type = #tpu.core_type<tc>, window_params = [{pipeline_mode = #tpu.pipeline_mode<synchronous>, transform_indices = @transform_0, window_bounds = array<i64: 1, 298>}, {pipeline_mode = #tpu.pipeline_mode<synchronous>, transform_indices = @transform_1, window_bounds = array<i64: 1, 298>}, {transform_indices = @transform_2, window_bounds = array<i64: 8, 298>}, {transform_indices = @transform_3, window_bounds = array<i64: 8, 1>}, {transform_indices = @transform_4, window_bounds = array<i64: 1, 8, 128>}]} {
    %c0_i32 = arith.constant 0 : i32
    %0 = arith.cmpi eq, %arg1, %c0_i32 : i32
    %1 = arith.extui %0 : i1 to i32
    %c0_i32_0 = arith.constant 0 : i32
    %2 = arith.cmpi ne, %1, %c0_i32_0 : i32
    scf.if %2 {
      %cst_21 = arith.constant 0.000000e+00 : f32
      %50 = vector.broadcast %cst_21 : f32 to vector<1x1xf32>
      %c0_22 = arith.constant 0 : index
      %c0_23 = arith.constant 0 : index
      %51 = vector.load %arg7[%c0_22, %c0_23] : memref<1x1xf32, #tpu.memory_space<vmem>>, vector<1x1xf32>
      tpu.vector_store %arg7[%c0_22, %c0_23], %50 {strides = array<i32>} : memref<1x1xf32, #tpu.memory_space<vmem>>, vector<1x1xf32>,
    } else {
    }
    %c0 = arith.constant 0 : index
    %c0_1 = arith.constant 0 : index
    %3 = vector.load %arg4[%c0, %c0_1] : memref<8x298xf32, #tpu.memory_space<vmem>>, vector<8x298xf32>
    %c0_2 = arith.constant 0 : index
    %c0_3 = arith.constant 0 : index
    %4 = vector.load %arg5[%c0_2, %c0_3] : memref<8x1xi32, #tpu.memory_space<vmem>>, vector<8x1xi32>
    %c0_4 = arith.constant 0 : index
    %c0_5 = arith.constant 0 : index
    %5 = vector.load %arg2[%c0_4, %c0_5] : memref<1x298xi32, #tpu.memory_space<vmem>>, vector<1x298xi32>
    %c0_6 = arith.constant 0 : index
    %c0_7 = arith.constant 0 : index
    %6 = vector.load %arg3[%c0_6, %c0_7] : memref<1x298xf32, #tpu.memory_space<vmem>>, vector<1x298xf32>
    %7 = vector.broadcast %6 : vector<1x298xf32> to vector<8x298xf32>
    %8 = arith.addf %3, %7 : vector<8x298xf32>
    %cst = arith.constant dense<0xFF800000> : vector<8xf32>
    %9 = vector.multi_reduction <maximumf>, %8, %cst [1] : vector<8x298xf32> to vector<8xf32>
    %10 = vector.shape_cast %9 : vector<8xf32> to vector<8x1xf32>
    %11 = vector.broadcast %10 : vector<8x1xf32> to vector<8x298xf32>
    %12 = arith.subf %8, %11 : vector<8x298xf32>
    %13 = math.exp %12 : vector<8x298xf32>
    %cst_8 = arith.constant dense<0.000000e+00> : vector<8xf32>
    %14 = vector.multi_reduction <add>, %13, %cst_8 [1] : vector<8x298xf32> to vector<8xf32>
    %15 = vector.shape_cast %14 : vector<8xf32> to vector<8x1xf32>
    %16 = math.log %15 : vector<8x1xf32>
    %17 = arith.addf %10, %16 : vector<8x1xf32>
    %c1_i32 = arith.constant 1 : i32
    %18 = arith.muli %arg0, %c1_i32 : i32
    %19 = arith.addi %18, %arg1 : i32
    %20 = tpu.iota {dimensions = array<i32: 0>} : vector<8x1xi32>
    %c8_i32 = arith.constant 8 : i32
    %21 = arith.muli %19, %c8_i32 : i32
    %22 = vector.broadcast %21 : i32 to vector<8x1xi32>
    %23 = arith.addi %22, %20 : vector<8x1xi32>
    %c8_i32_9 = arith.constant 8 : i32
    %24 = vector.broadcast %c8_i32_9 : i32 to vector<8x1xi32>
    %25 = arith.cmpi slt, %23, %24 : vector<8x1xi32>
    %c79_i32 = arith.constant 79 : i32
    %26 = vector.broadcast %c79_i32 : i32 to vector<8x1xi32>
    %27 = arith.addi %4, %26 : vector<8x1xi32>
    %28 = vector.broadcast %5 : vector<1x298xi32> to vector<8x298xi32>
    %29 = vector.broadcast %27 : vector<8x1xi32> to vector<8x298xi32>
    %30 = arith.cmpi eq, %28, %29 : vector<8x298xi32>
    %31 = vector.broadcast %25 : vector<8x1xi1> to vector<8x298xi1>
    %32 = arith.andi %30, %31 : vector<8x298xi1>
    %cst_10 = arith.constant 0.000000e+00 : f32
    %33 = vector.broadcast %cst_10 : f32 to vector<8x298xf32>
    %34 = arith.select %32, %3, %33 : vector<8x298xi1>, vector<8x298xf32>
    %cst_11 = arith.constant dense<0.000000e+00> : vector<298xf32>
    %35 = vector.multi_reduction <add>, %34, %cst_11 [0] : vector<8x298xf32> to vector<298xf32>
    %36 = vector.shape_cast %35 : vector<298xf32> to vector<1x298xf32>
    %cst_12 = arith.constant dense<0.000000e+00> : vector<1xf32>
    %37 = vector.multi_reduction <add>, %36, %cst_12 [1] : vector<1x298xf32> to vector<1xf32>
    %38 = vector.shape_cast %37 : vector<1xf32> to vector<1x1xf32>
    %cst_13 = arith.constant 0.000000e+00 : f32
    %39 = vector.broadcast %cst_13 : f32 to vector<8x1xf32>
    %40 = arith.select %25, %17, %39 : vector<8x1xi1>, vector<8x1xf32>
    %cst_14 = arith.constant dense<0.000000e+00> : vector<1xf32>
    %41 = vector.multi_reduction <add>, %40, %cst_14 [0] : vector<8x1xf32> to vector<1xf32>
    %42 = vector.shape_cast %41 : vector<1xf32> to vector<1x1xf32>
    %c0_15 = arith.constant 0 : index
    %c0_16 = arith.constant 0 : index
    %43 = vector.load %arg7[%c0_15, %c0_16] : memref<1x1xf32, #tpu.memory_space<vmem>>, vector<1x1xf32>
    %44 = arith.subf %42, %38 : vector<1x1xf32>
    %45 = arith.addf %43, %44 : vector<1x1xf32>
    %c0_17 = arith.constant 0 : index
    %c0_18 = arith.constant 0 : index
    %46 = vector.load %arg7[%c0_17, %c0_18] : memref<1x1xf32, #tpu.memory_space<vmem>>, vector<1x1xf32>
    tpu.vector_store %arg7[%c0_17, %c0_18], %45 {strides = array<i32>} : memref<1x1xf32, #tpu.memory_space<vmem>>, vector<1x1xf32>,
    %c0_i32_19 = arith.constant 0 : i32
    %47 = arith.cmpi eq, %arg1, %c0_i32_19 : i32
    %48 = arith.extui %47 : i1 to i32
    %c0_i32_20 = arith.constant 0 : i32
    %49 = arith.cmpi ne, %48, %c0_i32_20 : i32
    scf.if %49 {
      %c0_21 = arith.constant 0 : index
      %c0_22 = arith.constant 0 : index
      %50 = vector.load %arg7[%c0_21, %c0_22] : memref<1x1xf32, #tpu.memory_space<vmem>>, vector<1x1xf32>
      %51 = vector.shape_cast %50 : vector<1x1xf32> to vector<1x1x1xf32>
      %52 = vector.broadcast %51 : vector<1x1x1xf32> to vector<1x8x128xf32>
      %c0_23 = arith.constant 0 : index
      %c0_24 = arith.constant 0 : index
      %c0_25 = arith.constant 0 : index
      %53 = vector.load %arg6[%c0_23, %c0_24, %c0_25] : memref<1x8x128xf32, #tpu.memory_space<vmem>>, vector<1x8x128xf32>
      tpu.vector_store %arg6[%c0_23, %c0_24, %c0_25], %52 {strides = array<i32>} : memref<1x8x128xf32, #tpu.memory_space<vmem>>, vector<1x8x128xf32>,
    } else {
    }
    return
  }
  func.func @transform_0(%arg0: i32, %arg1: i32) -> (i32, i32) {
    %c0_i32 = arith.constant 0 : i32
    %c0_i32_0 = arith.constant 0 : i32
    %c0_i32_1 = arith.constant 0 : i32
    return %c0_i32, %c0_i32_0 : i32, i32
  }
  func.func @transform_1(%arg0: i32, %arg1: i32) -> (i32, i32) {
    %c0_i32 = arith.constant 0 : i32
    %c0_i32_0 = arith.constant 0 : i32
    %c0_i32_1 = arith.constant 0 : i32
    return %c0_i32, %c0_i32_0 : i32, i32
  }
  func.func @transform_2(%arg0: i32, %arg1: i32) -> (i32, i32) {
    %c1_i32 = arith.constant 1 : i32
    %0 = arith.muli %arg0, %c1_i32 : i32
    %1 = arith.addi %0, %arg1 : i32
    %c0_i32 = arith.constant 0 : i32
    %2 = arith.minsi %1, %c0_i32 : i32
    %c0_i32_0 = arith.constant 0 : i32
    %c0_i32_1 = arith.constant 0 : i32
    return %2, %c0_i32_0 : i32, i32
  }
  func.func @transform_3(%arg0: i32, %arg1: i32) -> (i32, i32) {
    %c1_i32 = arith.constant 1 : i32
    %0 = arith.muli %arg0, %c1_i32 : i32
    %1 = arith.addi %0, %arg1 : i32
    %c0_i32 = arith.constant 0 : i32
    %2 = arith.minsi %1, %c0_i32 : i32
    %c0_i32_0 = arith.constant 0 : i32
    %c0_i32_1 = arith.constant 0 : i32
    return %2, %c0_i32_0 : i32, i32
  }
  func.func @transform_4(%arg0: i32, %arg1: i32) -> (i32, i32, i32) {
    %c0_i32 = arith.constant 0 : i32
    %c0_i32_0 = arith.constant 0 : i32
    %c0_i32_1 = arith.constant 0 : i32
    return %arg0, %c0_i32, %c0_i32_0 : i32, i32, i32
  }
}

</mosaic_0001>

<bundles_post_ra>
// kernel: tpu_custom_call.1
= control target key start
LH: loop header
LB: loop body
LE: loop exit
PB: predicated region body
PF: predicated region fallthrough
CT: control target
= control target key end

     0   :  { %9 = vsyncpa [#allocation4], 0  ;;  %s358_s0 = inlined_call_operand.vmem [shape: s32[1,298], index: 0, kind: input, shape index: {}]   ;;  %s359_s1 = inlined_call_operand.vmem [shape: f32[1,298], index: 1, kind: input, shape index: {}]   ;;  %s360_s2 = inlined_call_operand.hbm [shape: f32[8,298], index: 2, kind: input, shape index: {}]   ;;  %s361_s3 = inlined_call_operand.vmem [shape: s32[8,1], index: 3, kind: input, shape index: {}]   ;;  %s362_s4 = inlined_call_operand.hbm [shape: f32[1,8,128], index: 4, kind: output, shape index: {}]  }
   0x1   :  { %10 = vsyncpa [#allocation5], 0  ;;  %s290_s15 = smov [#allocation3]   ;;  %s242_s19 = scalar_lea.hbm %s360_s2, 384 }
   0x2   :  { %s27_s16 = sshll.u32 %s290_s15, 4  ;;  %p243_p0 = scmp.ne.s32.totalorder %s360_s2, %s242_s19  ;;  %s28_s16 = int_to_ptr.vmem [resolvable:$true] %s27_s16 }
   0x3   :  { %p246_p1 = scmp.lt.u32.totalorder %s242_s19, %s360_s2 }
   0x5   :  { %p248_p2 = pnand %p246_p1, %p243_p0 }
   0x7   :  { %251 = shalt.err (!%p248_p2)
}
   0x8   :  { %s252_s24 = scalar_lea.vmem %s28_s16, 384  ;;  %p257_p4 = scmp.lt.s32.totalorder %s28_s16, %s28_s16 }
   0x9   :  { %p253_p3 = scmp.ne.s32.totalorder %s28_s16, %s252_s24  ;;  %p258_p5 = scmp.lt.s32.totalorder %s252_s24, %s252_s24 }
   0xb   :  { %p259_p6 = por %p258_p5, %p257_p4 }
   0xd   :  { %p260_p7 = pnand %p259_p6, %p253_p3 }
   0xf   :  { %263 = shalt.err (!%p260_p7)
}
  0x10   :  { %30 = dma.hbm_to_vmem [thread:$0]  %s360_s2, 384, %s28_s16, [#allocation4]  }
  0x11   :  { %286 = dma.done.wait [#allocation4], 384  }
  0x12   :  { %287 = vsyncadd [#allocation4], 4294966912  ;;  %v79_v0 = vlaneseq  ;;  %v291_v1 = vmov 0   ;;  %v72_v6 = vld [vmem:[#allocation3] sm:$0xff]  ;;  %v73_v7 = vld [vmem:[#allocation3 + $0x8] sm:$0xff]  ;;  %vm97_vm0 = vcmask 343040  }
  0x13   :  { %232 = vset.pattern.permute.xlu0 %v291_v1  ;;  %233 = vset.pattern.permute.xlu1 %v291_v1  ;;  %v74_v8 = vld [vmem:[#allocation3 + $0x10] sm:$0xff]  ;;  %v77_v9 = vld [vmem:[%s359_s1] sm:$0x7]  ;;  %vm70_vm4 = vcmask 0  }
  0x14   :  { %v80_v2 = vshrl.u32 %v79_v0, 7  ;;  %v75_v19 = vld [vmem:[%s361_s3] sm:$0xff]  ;;  %v292_v0 = vmov 0.0  }
  0x15   :  { %v127_v20 = vadd.s32 79, %v75_v19  ;;  %v76_v25 = vld [vmem:[%s358_s0] sm:$0x7]  ;;  %71 = vst.msk [vmem:[#allocation2] sm:$0x1] %vm70_vm4, %v292_v0  ;;  %s293_s0 = smov [#allocation6]  }
  0x16   :  { %v81_v3 = vsub.s32 0, %v80_v2  ;;  %v85_v4 = vsub.s32 1, %v80_v2  ;;  %v89_v5 = vsub.s32 2, %v80_v2  ;;  %s210_s3 = sshll.u32 %s293_s0, 4  ;;  %s211_s3 = int_to_ptr.vmem [resolvable:$true] %s210_s3 }
  0x17   :  { %s264_s5 = scalar_lea.vmem %s211_s3, 128  ;;  %p269_p9 = scmp.lt.s32.totalorder %s211_s3, %s211_s3 }
  0x18   :  { %v82_v10 = vrot.slane %v77_v9, %v81_v3  ;;  %v86_v11 = vrot.slane %v77_v9, %v85_v4  ;;  %v90_v12 = vrot.slane %v77_v9, %v89_v5  ;;  %v131_v29 = vrot.slane %v76_v25, %v81_v3  ;;  %p265_p8 = scmp.ne.s32.totalorder %s211_s3, %s264_s5  ;;  %p270_p10 = scmp.lt.s32.totalorder %s264_s5, %s264_s5 }
  0x19   :  { %v135_v30 = vrot.slane %v76_v25, %v85_v4  ;;  %v139_v31 = vrot.slane %v76_v25, %v89_v5 }
  0x1a   :  { %v94_v13 = vadd.f32 %v82_v10, %v72_v6  ;;  %v95_v14 = vadd.f32 %v86_v11, %v73_v7  ;;  %v96_v15 = vadd.f32 %v90_v12, %v74_v8  ;;  %p271_p11 = por %p270_p10, %p269_p9 }
  0x1c   :  { %v98_v16 = vsel %vm97_vm0, %v96_v15, -inf  ;;  %v99_v17 = vmax.f32 %v94_v13, %v95_v14  ;;  %v185_v12 = vld [vmem:[#allocation2] sm:$0x1]  ;;  %p272_p12 = pnand %p271_p11, %p265_p8 }
  0x1e   :  { %v100_v18 = vmax.f32 %v99_v17, %v98_v16 }
  0x20   :  { %101 = vmax.xlane.f32.xlu0 %v100_v18 }
  0x36   :  { %141 = vperm.xlu0 %232, %v127_v20  }
  0xad   :  { %v102_v21 = vpop.xlane.xlu0 %101 }
  0xae   :  { %v103_v22 = vsub.f32 %v94_v13, %v102_v21  ;;  %v104_v23 = vsub.f32 %v95_v14, %v102_v21  ;;  %v105_v24 = vsub.f32 %v96_v15, %v102_v21 }
  0xb0   :  { %v106_v26 = vmul.f32 1.442695, %v103_v22  ;;  %v108_v27 = vmul.f32 1.442695, %v104_v23  ;;  %v110_v28 = vmul.f32 1.442695, %v105_v24 }
  0xb2   :  { %234 = vpow2.f32 %v106_v26 }
  0xb3   :  { %236 = vpow2.f32 %v108_v27 }
  0xb4   :  { %238 = vpow2.f32 %v110_v28 }
  0xb5   :  { %v142_v32 = vpop.permute.xlu0 %141 }
  0xb6   :  { %vm143_vm1 = vcmp.eq.s32.totalorder %v131_v29, %v142_v32  ;;  %vm144_vm2 = vcmp.eq.s32.totalorder %v135_v30, %v142_v32  ;;  %vm145_vm3 = vcmp.eq.s32.totalorder %v139_v31, %v142_v32 }
  0xb7   :  { %v151_v33 = vsel %vm143_vm1, %v72_v6, 0.0  ;;  %v152_v34 = vsel %vm144_vm2, %v73_v7, 0.0  ;;  %v153_v35 = vsel %vm145_vm3, %v74_v8, 0.0 }
  0xb8   :  { %v154_v36 = vrot.slane %v151_v33, 4  ;;  %v160_v37 = vrot.slane %v152_v34, 4  ;;  %v166_v38 = vsel %vm97_vm0, %v153_v35, 0.0 }
  0xb9   :  { %v167_v39 = vrot.slane %v166_v38, 4 }
  0xba   :  { %v155_v40 = vadd.f32 %v154_v36, %v151_v33  ;;  %v161_v41 = vadd.f32 %v160_v37, %v152_v34 }
  0xbb   :  { %v168_v42 = vadd.f32 %v167_v39, %v166_v38 }
  0xbc   :  { %v235_v43 = vpop.eup %234  ;;  %v156_v44 = vrot.slane %v155_v40, 2  ;;  %v162_v45 = vrot.slane %v161_v41, 2 }
  0xbd   :  { %v237_v46 = vpop.eup %236  ;;  %v169_v47 = vrot.slane %v168_v42, 2 }
  0xbe   :  { %v239_v48 = vpop.eup %238  ;;  %v112_v49 = vadd.f32 %v237_v46, %v235_v43  ;;  %v157_v50 = vadd.f32 %v156_v44, %v155_v40  ;;  %v163_v51 = vadd.f32 %v162_v45, %v161_v41 }
  0xbf   :  { %v113_v52 = vsel %vm97_vm0, %v239_v48, 0.0  ;;  %v170_v53 = vadd.f32 %v169_v47, %v168_v42 }
  0xc0   :  { %v114_v54 = vadd.f32 %v113_v52, %v112_v49  ;;  %v158_v55 = vrot.slane %v157_v50, 1  ;;  %v164_v56 = vrot.slane %v163_v51, 1 }
  0xc1   :  { %v171_v57 = vrot.slane %v170_v53, 1 }
  0xc2   :  { %115 = vadd.xlane.f32.xlu1 %v114_v54  ;;  %v159_v58 = vadd.f32 %v158_v55, %v157_v50  ;;  %v165_v59 = vadd.f32 %v164_v56, %v163_v51 }
  0xc3   :  { %v172_v60 = vadd.f32 %v171_v57, %v170_v53 }
  0xc4   :  { %v173_v61 = vadd.f32 %v165_v59, %v159_v58 }
  0xc5   :  { %v174_v62 = vsel %vm97_vm0, %v172_v60, 0.0 }
  0xc6   :  { %v175_v63 = vadd.f32 %v174_v62, %v173_v61 }
  0xc8   :  { %176 = vadd.xlane.f32.xlu1 %v175_v63 }
 0x14f   :  { %v116_v1 = vpop.xlane.xlu1 %115 }
 0x150   :  { %240 = vlog2.f32 %v116_v1 }
 0x155   :  { %v177_v11 = vpop.xlane.xlu1 %176 }
 0x15a   :  { %v241_v2 = vpop.eup %240 }
 0x15b   :  { %v118_v3 = vmul.f32 0.6931472, %v241_v2 }
 0x15d   :  { %v119_v4 = vadd.f32 %v118_v3, %v102_v21 }
 0x15f   :  { %v179_v5 = vrot.slane %v119_v4, 4 }
 0x161   :  { %v180_v6 = vadd.f32 %v179_v5, %v119_v4 }
 0x163   :  { %v181_v7 = vrot.slane %v180_v6, 2 }
 0x165   :  { %v182_v8 = vadd.f32 %v181_v7, %v180_v6 }
 0x167   :  { %v183_v9 = vrot.slane %v182_v8, 1 }
 0x169   :  { %v184_v10 = vadd.f32 %v183_v9, %v182_v8 }
 0x16b   :  { %v186_v13 = vsub.f32 %v184_v10, %v177_v11 }
 0x16d   :  { %v187_v14 = vadd.f32 %v186_v13, %v185_v12 }
 0x16f   :  { %189 = vst.msk [vmem:[#allocation2] sm:$0x1] %vm70_vm4, %v187_v14 }
 0x176   :  { %v227_v15 = vld [vmem:[#allocation2] ss:$0 sm:$0xff] }
 0x177   :  { %200 = vperm.xlu1 %233, %v227_v15  }
 0x1f6   :  { %v201_v16 = vpop.permute.xlu1 %200 }
 0x1f7   :  { %203 = vst [vmem:[#allocation6] sm:$0xff] %v201_v16 }
 0x1f8   :  { %275 = shalt.err (!%p272_p12)
}
 0x1f9   :  { %s276_s8 = scalar_lea.hbm %s362_s4, 128 }
 0x1fa   :  { %p277_p13 = scmp.ne.s32.totalorder %s362_s4, %s276_s8  ;;  %p280_p0 = scmp.lt.u32.totalorder %s276_s8, %s362_s4 }
 0x1fc   :  { %p282_p1 = pnand %p280_p0, %p277_p13 }
 0x1fe   :  { %285 = shalt.err (!%p282_p1)
}
 0x1ff   :  { %213 = dma.vmem_to_hbm [thread:$0]  %s211_s3, 128, %s362_s4, [#allocation5]  }
 0x200   :  { %288 = dma.done.wait [#allocation5], 128  }
 0x201   :  { %289 = vsyncadd [#allocation5], 4294967168 }
 0x202   :  { %217 = vsyncpa [#allocation4], 1 }
 0x203   :  { %218 = vsyncpa [#allocation5], 1 }

</bundles_post_ra>
